<compile_context>
chip_gen: v7x
topology: tpu7x:2x2x1
jax: 0.10.0
libtpu: 0.0.40
codegen_flags: <defaults>
</compile_context>

<pallas_src>
import jax
import jax.numpy as jnp
from jax.experimental import pallas as pl
from jax.experimental.pallas import tpu as pltpu


def _round_up(x, m):
    return (x + m - 1) // m * m


# ---------------------------------------------------------------------------
# Kernel body: one batch tile per grid step, weights/biases resident in VMEM.
# ---------------------------------------------------------------------------
def merge_layer_kernel(x1_ref, x2_ref, w1a_ref, w1b_ref, b1_ref,
                       w2_ref, b2_ref, o_ref):
    cdt = w1a_ref.dtype
    # fc1 as split-K (this *is* the torch.cat): two bf16 MXU matmuls,
    # f32 accumulation.
    h = jnp.dot(x1_ref[...].astype(cdt), w1a_ref[...],
                preferred_element_type=jnp.float32)
    h = h + jnp.dot(x2_ref[...].astype(cdt), w1b_ref[...],
                    preferred_element_type=jnp.float32)
    # Bias + ReLU epilogue in f32 (VPU).
    h = jnp.maximum(h + b1_ref[...], 0.0)
    # fc2: bf16 MXU matmul, f32 accumulation, f32 bias, cast on store.
    y = jnp.dot(h.astype(w2_ref.dtype), w2_ref[...],
                preferred_element_type=jnp.float32)
    o_ref[...] = (y + b2_ref[...]).astype(o_ref.dtype)


# ---------------------------------------------------------------------------
# One-time parameter preparation (hoisted out of the per-call path).
# ---------------------------------------------------------------------------
def prepare_params(w1, b1, w2, b2, dim1, *, compute_dtype=jnp.bfloat16):
    """Pad feature dims to 128 lanes, cast weights to the MXU dtype and split
    W1 into its x1/x2 halves.  Do this once at init and reuse every call.

    w1: (dim1+dim2, dim3)   [transposed vs PyTorch Linear], b1: (dim3,)
    w2: (dim3, dim4), b2: (dim4,)
    """
    d_in, dim3 = w1.shape
    dim2 = d_in - dim1
    dim4 = w2.shape[1]
    assert dim2 > 0 and w2.shape[0] == dim3

    d3_p = _round_up(dim3, 128)
    d4_p = _round_up(dim4, 128)

    w1a = jnp.zeros((dim1, d3_p), compute_dtype)
    w1a = w1a.at[:, :dim3].set(w1[:dim1].astype(compute_dtype))
    w1b = jnp.zeros((dim2, d3_p), compute_dtype)
    w1b = w1b.at[:, :dim3].set(w1[dim1:].astype(compute_dtype))
    w2_p = jnp.zeros((d3_p, d4_p), compute_dtype)
    w2_p = w2_p.at[:dim3, :dim4].set(w2.astype(compute_dtype))
    b1_p = jnp.zeros((1, d3_p), jnp.float32).at[0, :dim3].set(
        b1.astype(jnp.float32))
    b2_p = jnp.zeros((1, d4_p), jnp.float32).at[0, :dim4].set(
        b2.astype(jnp.float32))

    return {"w1a": w1a, "w1b": w1b, "b1": b1_p, "w2": w2_p, "b2": b2_p,
            "dim1": dim1, "dim2": dim2, "dim3": dim3, "dim4": dim4}


# ---------------------------------------------------------------------------
# Tiling / VMEM-budget heuristics.
# ---------------------------------------------------------------------------
def _vmem_budget_bytes():
    """~75% of the device's VMEM capacity (48 MiB on v7x, 96 MiB on v5e/v6e)."""
    cap = None
    try:
        cap = getattr(pltpu.get_tpu_info(), "vmem_capacity_bytes", None)
    except Exception:
        cap = None
    if not cap:
        cap = 64 * 1024 * 1024  # conservative default (v7x)
    return min(int(cap) * 3 // 4, 100 * 1024 * 1024)


def _pick_batch_tile(B, tile_b):
    """Balanced batch tile: multiple of 16 (bf16 sublane tile), minimal
    padding for awkward B, and >=2 grid steps when B > 16 so both v7x
    TensorCores get work under the 'parallel' grid axis."""
    tile_b = max(16, int(tile_b))
    min_tiles = 2 if B > 16 else 1
    num_tiles = max(pl.cdiv(B, tile_b), min_tiles)
    return _round_up(pl.cdiv(B, num_tiles), 16)


def _vmem_estimate(tb, dim1, dim2, d3_p, d4_p, x_bytes, c_bytes, o_bytes,
                   weight_bufs):
    act_in = 2 * tb * (dim1 + dim2) * x_bytes        # double-buffered x1/x2
    act_out = 2 * tb * d4_p * o_bytes                # double-buffered output
    weights = weight_bufs * ((dim1 + dim2) * d3_p + d3_p * d4_p) * c_bytes
    biases = weight_bufs * (d3_p + d4_p) * 4
    interm = tb * d3_p * (4 + c_bytes) + tb * d4_p * 4  # f32 h, bf16 h, f32 y
    return act_in + act_out + weights + biases + interm


def _fit_tb_to_vmem(tb, budget, **kw):
    while tb > 16 and _vmem_estimate(tb, **kw) > budget:
        smaller = _round_up(tb // 2, 16)
        if smaller >= tb:
            break
        tb = smaller
    return tb


# ---------------------------------------------------------------------------
# Per-call wrapper.
# ---------------------------------------------------------------------------
def merge_layer(x1, x2, params, *, tile_b=256, out_dtype=jnp.bfloat16):
    """x1: (B, dim1), x2: (B, dim2); params from prepare_params()."""
    B, dim1 = x1.shape
    B2, dim2 = x2.shape
    assert B == B2 and dim1 == params["dim1"] and dim2 == params["dim2"]

    w1a, w1b = params["w1a"], params["w1b"]
    b1_p, w2_p, b2_p = params["b1"], params["w2"], params["b2"]
    d3_p, d4_p = w1a.shape[1], w2_p.shape[1]
    dim4 = params["dim4"]

    x_bytes = jnp.dtype(x1.dtype).itemsize
    c_bytes = jnp.dtype(w1a.dtype).itemsize
    o_bytes = jnp.dtype(out_dtype).itemsize

    vmem_limit = _vmem_budget_bytes()
    tb = _pick_batch_tile(B, tile_b)
    tb = _fit_tb_to_vmem(
        tb, int(vmem_limit * 0.9),
        dim1=dim1, dim2=dim2, d3_p=d3_p, d4_p=d4_p,
        x_bytes=x_bytes, c_bytes=c_bytes, o_bytes=o_bytes,
        weight_bufs=2)  # conservative: assume double-buffered weights fit too
    grid = pl.cdiv(B, tb)  # partial last block is masked by Pallas

    flops = 2 * B * (dim1 + dim2) * d3_p + 2 * B * d3_p * d4_p
    bytes_accessed = (B * (dim1 + dim2) * x_bytes
                      + ((dim1 + dim2) * d3_p + d3_p * d4_p) * c_bytes
                      + (d3_p + d4_p) * 4
                      + B * d4_p * o_bytes)

    def _run(single_buffer_weights):
        def resident(shape):
            # Constant index_map -> block stays VMEM-resident across the grid.
            if single_buffer_weights:
                return pl.BlockSpec(shape, lambda i: (0, 0),
                                    pipeline_mode=pl.Buffered(1))
            return pl.BlockSpec(shape, lambda i: (0, 0))

        return pl.pallas_call(
            merge_layer_kernel,
            out_shape=jax.ShapeDtypeStruct((B, d4_p), out_dtype),
            grid=(grid,),
            in_specs=[
                # Activations: tiled over batch, double-buffered by Pallas.
                pl.BlockSpec((tb, dim1), lambda i: (i, 0)),
                pl.BlockSpec((tb, dim2), lambda i: (i, 0)),
                # Weights / biases: VMEM-resident.
                resident((dim1, d3_p)),
                resident((dim2, d3_p)),
                resident((1, d3_p)),
                resident((d3_p, d4_p)),
                resident((1, d4_p)),
            ],
            out_specs=pl.BlockSpec((tb, d4_p), lambda i: (i, 0)),
            compiler_params=pltpu.CompilerParams(
                dimension_semantics=("parallel",),
                vmem_limit_bytes=vmem_limit),
            cost_estimate=pl.CostEstimate(
                flops=flops, transcendentals=0,
                bytes_accessed=bytes_accessed),
        )(x1, x2, w1a, w1b, b1_p, w2_p, b2_p)

    try:
        out = _run(single_buffer_weights=True)
    except Exception:
        # pl.Buffered(1) on resident operands not supported by this JAX build;
        # fall back to the default double-buffered pipeline.
        out = _run(single_buffer_weights=False)

    return out[:, :dim4] if d4_p != dim4 else out


# ---------------------------------------------------------------------------
# Init matching the PyTorch module (xavier_normal weights, default-uniform bias).
# ---------------------------------------------------------------------------
def init_params(key, dim1, dim2, dim3, dim4, dtype=jnp.float32):
    k1, k2, k3, k4 = jax.random.split(key, 4)
    fan_in1, fan_out1 = dim1 + dim2, dim3
    std1 = (2.0 / (fan_in1 + fan_out1)) ** 0.5
    w1 = std1 * jax.random.normal(k1, (fan_in1, fan_out1), dtype)  # (in, out)
    bound1 = 1.0 / (fan_in1 ** 0.5)
    b1 = jax.random.uniform(k2, (fan_out1,), dtype, -bound1, bound1)

    fan_in2, fan_out2 = dim3, dim4
    std2 = (2.0 / (fan_in2 + fan_out2)) ** 0.5
    w2 = std2 * jax.random.normal(k3, (fan_in2, fan_out2), dtype)
    bound2 = 1.0 / (fan_in2 ** 0.5)
    b2 = jax.random.uniform(k4, (fan_out2,), dtype, -bound2, bound2)
    return w1, b1, w2, b2


if __name__ == "__main__":
    # B=40 exercises >1 grid step and the masked partial last block.
    B, dim1, dim2, dim3, dim4 = 40, 32, 32, 64, 32

    key = jax.random.PRNGKey(0)
    kx1, kx2, kp = jax.random.split(key, 3)
    x1 = jax.random.normal(kx1, (B, dim1), jnp.float32)
    x2 = jax.random.normal(kx2, (B, dim2), jnp.float32)
    w1, b1, w2, b2 = init_params(kp, dim1, dim2, dim3, dim4)

    params = prepare_params(w1, b1, w2, b2, dim1)   # once, at init time

    out = merge_layer(x1, x2, params)               # bf16 output by default
    jax.block_until_ready(out)
    assert out.shape == (B, dim4), out.shape
    assert out.dtype == jnp.bfloat16, out.dtype

    # Pure-JAX reference mirroring the kernel numerics: split-K fc1 with bf16
    # MXU operands, f32 accumulation, f32 bias/ReLU, bf16 final store.
    bf16 = jnp.bfloat16
    h_ref = (jnp.dot(x1.astype(bf16), w1[:dim1].astype(bf16),
                     preferred_element_type=jnp.float32)
             + jnp.dot(x2.astype(bf16), w1[dim1:].astype(bf16),
                       preferred_element_type=jnp.float32))
    h_ref = jnp.maximum(h_ref + b1, 0.0)
    ref = jnp.dot(h_ref.astype(bf16), w2.astype(bf16),
                  preferred_element_type=jnp.float32) + b2
    assert jnp.allclose(out.astype(jnp.float32), ref, atol=2e-2, rtol=2e-2)

    print("KERNEL_OK")
</pallas_src>

<mosaic_0001>
module attributes {stable_mosaic.version = 11 : i64} {
  func.func @merge_layer_kernel(%arg0: i32, %arg1: memref<32x32xf32, #tpu.memory_space<vmem>>, %arg2: memref<32x32xf32, #tpu.memory_space<vmem>>, %arg3: memref<32x128xbf16, #tpu.memory_space<vmem>>, %arg4: memref<32x128xbf16, #tpu.memory_space<vmem>>, %arg5: memref<1x128xf32, #tpu.memory_space<vmem>>, %arg6: memref<128x128xbf16, #tpu.memory_space<vmem>>, %arg7: memref<1x128xf32, #tpu.memory_space<vmem>>, %arg8: memref<32x128xbf16, #tpu.memory_space<vmem>>) attributes {dimension_semantics = [#tpu.dimension_semantics<parallel>], iteration_bounds = array<i64: 2>, scalar_prefetch = 0 : i64, scratch_operands = 0 : i64, tpu.core_type = #tpu.core_type<tc>, window_params = [{transform_indices = @transform_0, window_bounds = array<i64: 32, 32>}, {transform_indices = @transform_1, window_bounds = array<i64: 32, 32>}, {pipeline_mode = #tpu.pipeline_mode<synchronous>, transform_indices = @transform_2, window_bounds = array<i64: 32, 128>}, {pipeline_mode = #tpu.pipeline_mode<synchronous>, transform_indices = @transform_3, window_bounds = array<i64: 32, 128>}, {pipeline_mode = #tpu.pipeline_mode<synchronous>, transform_indices = @transform_4, window_bounds = array<i64: 1, 128>}, {pipeline_mode = #tpu.pipeline_mode<synchronous>, transform_indices = @transform_5, window_bounds = array<i64: 128, 128>}, {pipeline_mode = #tpu.pipeline_mode<synchronous>, transform_indices = @transform_6, window_bounds = array<i64: 1, 128>}, {transform_indices = @transform_7, window_bounds = array<i64: 32, 128>}]} {
    %c0 = arith.constant 0 : index
    %c0_0 = arith.constant 0 : index
    %0 = vector.load %arg1[%c0, %c0_0] : memref<32x32xf32, #tpu.memory_space<vmem>>, vector<32x32xf32>
    %1 = arith.truncf %0 : vector<32x32xf32> to vector<32x32xbf16>
    %c0_1 = arith.constant 0 : index
    %c0_2 = arith.constant 0 : index
    %2 = vector.load %arg3[%c0_1, %c0_2] : memref<32x128xbf16, #tpu.memory_space<vmem>>, vector<32x128xbf16>
    %cst = arith.constant dense<0.000000e+00> : vector<32x128xf32>
    %3 = tpu.matmul %1, %2, %cst {dimension_numbers = #tpu.dot_dimension_numbers<[1], [0], [0], [1], [0, 0, 1, 1], [], []>} : vector<32x32xbf16>, vector<32x128xbf16>, vector<32x128xf32> -> vector<32x128xf32>
    %c0_3 = arith.constant 0 : index
    %c0_4 = arith.constant 0 : index
    %4 = vector.load %arg2[%c0_3, %c0_4] : memref<32x32xf32, #tpu.memory_space<vmem>>, vector<32x32xf32>
    %5 = arith.truncf %4 : vector<32x32xf32> to vector<32x32xbf16>
    %c0_5 = arith.constant 0 : index
    %c0_6 = arith.constant 0 : index
    %6 = vector.load %arg4[%c0_5, %c0_6] : memref<32x128xbf16, #tpu.memory_space<vmem>>, vector<32x128xbf16>
    %cst_7 = arith.constant dense<0.000000e+00> : vector<32x128xf32>
    %7 = tpu.matmul %5, %6, %cst_7 {dimension_numbers = #tpu.dot_dimension_numbers<[1], [0], [0], [1], [0, 0, 1, 1], [], []>} : vector<32x32xbf16>, vector<32x128xbf16>, vector<32x128xf32> -> vector<32x128xf32>
    %8 = arith.addf %3, %7 : vector<32x128xf32>
    %c0_8 = arith.constant 0 : index
    %c0_9 = arith.constant 0 : index
    %9 = vector.load %arg5[%c0_8, %c0_9] : memref<1x128xf32, #tpu.memory_space<vmem>>, vector<1x128xf32>
    %10 = vector.broadcast %9 : vector<1x128xf32> to vector<32x128xf32>
    %11 = arith.addf %8, %10 : vector<32x128xf32>
    %cst_10 = arith.constant 0.000000e+00 : f32
    %12 = vector.broadcast %cst_10 : f32 to vector<32x128xf32>
    %13 = arith.maximumf %11, %12 : vector<32x128xf32>
    %14 = arith.truncf %13 : vector<32x128xf32> to vector<32x128xbf16>
    %c0_11 = arith.constant 0 : index
    %c0_12 = arith.constant 0 : index
    %15 = vector.load %arg6[%c0_11, %c0_12] : memref<128x128xbf16, #tpu.memory_space<vmem>>, vector<128x128xbf16>
    %cst_13 = arith.constant dense<0.000000e+00> : vector<32x128xf32>
    %16 = tpu.matmul %14, %15, %cst_13 {dimension_numbers = #tpu.dot_dimension_numbers<[1], [0], [0], [1], [0, 0, 1, 1], [], []>} : vector<32x128xbf16>, vector<128x128xbf16>, vector<32x128xf32> -> vector<32x128xf32>
    %c0_14 = arith.constant 0 : index
    %c0_15 = arith.constant 0 : index
    %17 = vector.load %arg7[%c0_14, %c0_15] : memref<1x128xf32, #tpu.memory_space<vmem>>, vector<1x128xf32>
    %18 = vector.broadcast %17 : vector<1x128xf32> to vector<32x128xf32>
    %19 = arith.addf %16, %18 : vector<32x128xf32>
    %20 = arith.truncf %19 : vector<32x128xf32> to vector<32x128xbf16>
    %c0_16 = arith.constant 0 : index
    %c0_17 = arith.constant 0 : index
    %21 = vector.load %arg8[%c0_16, %c0_17] : memref<32x128xbf16, #tpu.memory_space<vmem>>, vector<32x128xbf16>
    tpu.vector_store %arg8[%c0_16, %c0_17], %20 {strides = array<i32>} : memref<32x128xbf16, #tpu.memory_space<vmem>>, vector<32x128xbf16>,
    return
  }
  func.func @transform_0(%arg0: i32) -> (i32, i32) {
    %c0_i32 = arith.constant 0 : i32
    %c0_i32_0 = arith.constant 0 : i32
    return %arg0, %c0_i32 : i32, i32
  }
  func.func @transform_1(%arg0: i32) -> (i32, i32) {
    %c0_i32 = arith.constant 0 : i32
    %c0_i32_0 = arith.constant 0 : i32
    return %arg0, %c0_i32 : i32, i32
  }
  func.func @transform_2(%arg0: i32) -> (i32, i32) {
    %c0_i32 = arith.constant 0 : i32
    %c0_i32_0 = arith.constant 0 : i32
    %c0_i32_1 = arith.constant 0 : i32
    return %c0_i32, %c0_i32_0 : i32, i32
  }
  func.func @transform_3(%arg0: i32) -> (i32, i32) {
    %c0_i32 = arith.constant 0 : i32
    %c0_i32_0 = arith.constant 0 : i32
    %c0_i32_1 = arith.constant 0 : i32
    return %c0_i32, %c0_i32_0 : i32, i32
  }
  func.func @transform_4(%arg0: i32) -> (i32, i32) {
    %c0_i32 = arith.constant 0 : i32
    %c0_i32_0 = arith.constant 0 : i32
    %c0_i32_1 = arith.constant 0 : i32
    return %c0_i32, %c0_i32_0 : i32, i32
  }
  func.func @transform_5(%arg0: i32) -> (i32, i32) {
    %c0_i32 = arith.constant 0 : i32
    %c0_i32_0 = arith.constant 0 : i32
    %c0_i32_1 = arith.constant 0 : i32
    return %c0_i32, %c0_i32_0 : i32, i32
  }
  func.func @transform_6(%arg0: i32) -> (i32, i32) {
    %c0_i32 = arith.constant 0 : i32
    %c0_i32_0 = arith.constant 0 : i32
    %c0_i32_1 = arith.constant 0 : i32
    return %c0_i32, %c0_i32_0 : i32, i32
  }
  func.func @transform_7(%arg0: i32) -> (i32, i32) {
    %c0_i32 = arith.constant 0 : i32
    %c0_i32_0 = arith.constant 0 : i32
    return %arg0, %c0_i32 : i32, i32
  }
}

module attributes {stable_mosaic.version = 11 : i64} {
  func.func @merge_layer_kernel(%arg0: i32, %arg1: memref<32x32xf32, #tpu.memory_space<vmem>>, %arg2: memref<32x32xf32, #tpu.memory_space<vmem>>, %arg3: memref<32x128xbf16, #tpu.memory_space<vmem>>, %arg4: memref<32x128xbf16, #tpu.memory_space<vmem>>, %arg5: memref<1x128xf32, #tpu.memory_space<vmem>>, %arg6: memref<128x128xbf16, #tpu.memory_space<vmem>>, %arg7: memref<1x128xf32, #tpu.memory_space<vmem>>, %arg8: memref<32x128xbf16, #tpu.memory_space<vmem>>) attributes {dimension_semantics = [#tpu.dimension_semantics<parallel>], iteration_bounds = array<i64: 2>, scalar_prefetch = 0 : i64, scratch_operands = 0 : i64, tpu.core_type = #tpu.core_type<tc>, window_params = [{transform_indices = @transform_0, window_bounds = array<i64: 32, 32>}, {transform_indices = @transform_1, window_bounds = array<i64: 32, 32>}, {pipeline_mode = #tpu.pipeline_mode<synchronous>, transform_indices = @transform_2, window_bounds = array<i64: 32, 128>}, {pipeline_mode = #tpu.pipeline_mode<synchronous>, transform_indices = @transform_3, window_bounds = array<i64: 32, 128>}, {pipeline_mode = #tpu.pipeline_mode<synchronous>, transform_indices = @transform_4, window_bounds = array<i64: 1, 128>}, {pipeline_mode = #tpu.pipeline_mode<synchronous>, transform_indices = @transform_5, window_bounds = array<i64: 128, 128>}, {pipeline_mode = #tpu.pipeline_mode<synchronous>, transform_indices = @transform_6, window_bounds = array<i64: 1, 128>}, {transform_indices = @transform_7, window_bounds = array<i64: 32, 128>}]} {
    %c0 = arith.constant 0 : index
    %c0_0 = arith.constant 0 : index
    %0 = vector.load %arg1[%c0, %c0_0] : memref<32x32xf32, #tpu.memory_space<vmem>>, vector<32x32xf32>
    %1 = arith.truncf %0 : vector<32x32xf32> to vector<32x32xbf16>
    %c0_1 = arith.constant 0 : index
    %c0_2 = arith.constant 0 : index
    %2 = vector.load %arg3[%c0_1, %c0_2] : memref<32x128xbf16, #tpu.memory_space<vmem>>, vector<32x128xbf16>
    %cst = arith.constant dense<0.000000e+00> : vector<32x128xf32>
    %3 = tpu.matmul %1, %2, %cst {dimension_numbers = #tpu.dot_dimension_numbers<[1], [0], [0], [1], [0, 0, 1, 1], [], []>} : vector<32x32xbf16>, vector<32x128xbf16>, vector<32x128xf32> -> vector<32x128xf32>
    %c0_3 = arith.constant 0 : index
    %c0_4 = arith.constant 0 : index
    %4 = vector.load %arg2[%c0_3, %c0_4] : memref<32x32xf32, #tpu.memory_space<vmem>>, vector<32x32xf32>
    %5 = arith.truncf %4 : vector<32x32xf32> to vector<32x32xbf16>
    %c0_5 = arith.constant 0 : index
    %c0_6 = arith.constant 0 : index
    %6 = vector.load %arg4[%c0_5, %c0_6] : memref<32x128xbf16, #tpu.memory_space<vmem>>, vector<32x128xbf16>
    %cst_7 = arith.constant dense<0.000000e+00> : vector<32x128xf32>
    %7 = tpu.matmul %5, %6, %cst_7 {dimension_numbers = #tpu.dot_dimension_numbers<[1], [0], [0], [1], [0, 0, 1, 1], [], []>} : vector<32x32xbf16>, vector<32x128xbf16>, vector<32x128xf32> -> vector<32x128xf32>
    %8 = arith.addf %3, %7 : vector<32x128xf32>
    %c0_8 = arith.constant 0 : index
    %c0_9 = arith.constant 0 : index
    %9 = vector.load %arg5[%c0_8, %c0_9] : memref<1x128xf32, #tpu.memory_space<vmem>>, vector<1x128xf32>
    %10 = vector.broadcast %9 : vector<1x128xf32> to vector<32x128xf32>
    %11 = arith.addf %8, %10 : vector<32x128xf32>
    %cst_10 = arith.constant 0.000000e+00 : f32
    %12 = vector.broadcast %cst_10 : f32 to vector<32x128xf32>
    %13 = arith.maximumf %11, %12 : vector<32x128xf32>
    %14 = arith.truncf %13 : vector<32x128xf32> to vector<32x128xbf16>
    %c0_11 = arith.constant 0 : index
    %c0_12 = arith.constant 0 : index
    %15 = vector.load %arg6[%c0_11, %c0_12] : memref<128x128xbf16, #tpu.memory_space<vmem>>, vector<128x128xbf16>
    %cst_13 = arith.constant dense<0.000000e+00> : vector<32x128xf32>
    %16 = tpu.matmul %14, %15, %cst_13 {dimension_numbers = #tpu.dot_dimension_numbers<[1], [0], [0], [1], [0, 0, 1, 1], [], []>} : vector<32x128xbf16>, vector<128x128xbf16>, vector<32x128xf32> -> vector<32x128xf32>
    %c0_14 = arith.constant 0 : index
    %c0_15 = arith.constant 0 : index
    %17 = vector.load %arg7[%c0_14, %c0_15] : memref<1x128xf32, #tpu.memory_space<vmem>>, vector<1x128xf32>
    %18 = vector.broadcast %17 : vector<1x128xf32> to vector<32x128xf32>
    %19 = arith.addf %16, %18 : vector<32x128xf32>
    %20 = arith.truncf %19 : vector<32x128xf32> to vector<32x128xbf16>
    %c0_16 = arith.constant 0 : index
    %c0_17 = arith.constant 0 : index
    %21 = vector.load %arg8[%c0_16, %c0_17] : memref<32x128xbf16, #tpu.memory_space<vmem>>, vector<32x128xbf16>
    tpu.vector_store %arg8[%c0_16, %c0_17], %20 {strides = array<i32>} : memref<32x128xbf16, #tpu.memory_space<vmem>>, vector<32x128xbf16>,
    return
  }
  func.func @transform_0(%arg0: i32) -> (i32, i32) {
    %c0_i32 = arith.constant 0 : i32
    %c0_i32_0 = arith.constant 0 : i32
    return %arg0, %c0_i32 : i32, i32
  }
  func.func @transform_1(%arg0: i32) -> (i32, i32) {
    %c0_i32 = arith.constant 0 : i32
    %c0_i32_0 = arith.constant 0 : i32
    return %arg0, %c0_i32 : i32, i32
  }
  func.func @transform_2(%arg0: i32) -> (i32, i32) {
    %c0_i32 = arith.constant 0 : i32
    %c0_i32_0 = arith.constant 0 : i32
    %c0_i32_1 = arith.constant 0 : i32
    return %c0_i32, %c0_i32_0 : i32, i32
  }
  func.func @transform_3(%arg0: i32) -> (i32, i32) {
    %c0_i32 = arith.constant 0 : i32
    %c0_i32_0 = arith.constant 0 : i32
    %c0_i32_1 = arith.constant 0 : i32
    return %c0_i32, %c0_i32_0 : i32, i32
  }
  func.func @transform_4(%arg0: i32) -> (i32, i32) {
    %c0_i32 = arith.constant 0 : i32
    %c0_i32_0 = arith.constant 0 : i32
    %c0_i32_1 = arith.constant 0 : i32
    return %c0_i32, %c0_i32_0 : i32, i32
  }
  func.func @transform_5(%arg0: i32) -> (i32, i32) {
    %c0_i32 = arith.constant 0 : i32
    %c0_i32_0 = arith.constant 0 : i32
    %c0_i32_1 = arith.constant 0 : i32
    return %c0_i32, %c0_i32_0 : i32, i32
  }
  func.func @transform_6(%arg0: i32) -> (i32, i32) {
    %c0_i32 = arith.constant 0 : i32
    %c0_i32_0 = arith.constant 0 : i32
    %c0_i32_1 = arith.constant 0 : i32
    return %c0_i32, %c0_i32_0 : i32, i32
  }
  func.func @transform_7(%arg0: i32) -> (i32, i32) {
    %c0_i32 = arith.constant 0 : i32
    %c0_i32_0 = arith.constant 0 : i32
    return %arg0, %c0_i32 : i32, i32
  }
}

</mosaic_0001>

<bundles_post_ra>
// kernel: tpu_custom_call.1
= control target key start
LH: loop header
LB: loop body
LE: loop exit
PB: predicated region body
PF: predicated region fallthrough
CT: control target
= control target key end

     0   :  { %12 = vsyncpa [#allocation3], 0  ;;  %s1198_s0 = inlined_call_operand.vmem [shape: f32[40,32], index: 0, kind: input, shape index: {}]   ;;  %s1199_s1 = inlined_call_operand.vmem [shape: f32[40,32], index: 1, kind: input, shape index: {}]   ;;  %s1200_s2 = inlined_call_operand.vmem [shape: bf16[32,128], index: 2, kind: input, shape index: {}]   ;;  %s1201_s3 = inlined_call_operand.vmem [shape: bf16[32,128], index: 3, kind: input, shape index: {}]   ;;  %s1202_s4 = inlined_call_operand.vmem [shape: f32[1,128], index: 4, kind: input, shape index: {}]   ;;  %s1203_s5 = inlined_call_operand.vmem [shape: bf16[128,128], index: 5, kind: input, shape index: {}]   ;;  %s1204_s6 = inlined_call_operand.vmem [shape: f32[1,128], index: 6, kind: input, shape index: {}]   ;;  %s1205_s7 = inlined_call_operand.hbm [shape: bf16[40,128], index: 7, kind: output, shape index: {}]  }
   0x1   :  { %14 = vsyncpa [#allocation3 + $0x1], 0  ;;  %s1026_s24 = smov 0   ;;  %s1028_s25 = smov 0  }
   0x2   :  { %s1030_s26 = smov 0   ;;  %s1032_s27 = smov 0  }
   0x3 LB: > { %s1047_s28 = sadd.s32 4294967295, %s981_s27   ;;  %s753_s29 = sadd.s32 4294967294, %s981_s27   ;;  %s981_s27 = sphi %s1032_s27, %s1211_s27   ;;  %s977_s26 = sphi %s1030_s26, %s1210_s26   ;;  %s973_s25 = sphi %s1028_s25, %s1209_s25   ;;  %s969_s24 = sphi %s1026_s24, %s1208_s24  }
   0x4   : > { %s1051_s30 = sadd.s32 1, %s981_s27   ;;  %s184_s8 = sadd.s32 1, %s977_s26 }
   0x5   : > { %s181_s9 = ssub.s32 %s981_s27, %s1051_s30  ;;  %p194_p0 = scmp.ne.s32.totalorder %s977_s26, %s973_s25 }
   0x6   : > { %p182_p1 = scmp.eq.s32.totalorder %s181_s9, 0  ;;  %p195_p2 = scmp.eq.s32.totalorder %s1047_s28, 1 }
   0x7   : > { %p200_p3 = scmp.ne.s32.totalorder %s973_s25, %s969_s24  ;;  %p201_p4 = scmp.eq.s32.totalorder %s753_s29, 1 }
   0x8   : > { %s1062_s10 = scalar_select %p182_p1, %s977_s26, %s184_s8  }
   0x9   : > { %p1064_p5 = por %p195_p2, %p194_p0  ;;  %p1068_p6 = por %p201_p4, %p200_p3 }
   0xa   : > { %p756_p7 = scmp.ge.s32.totalorder %s981_s27, 1  ;;  %p268_p8 = scmp.lt.s32.totalorder %s981_s27, 3 }
   0xc   : > { %p269_p9 = pnand %p756_p7, %p268_p8 }
   0xd   : > { %v907_v0 = vld [vmem:[%s1201_s3] sm:$0xff] (!%p269_p9)   ;;  %s1078_s15 = sshll.u32 (!%p269_p9), %s1047_s28, 2  ;;  %v908_v1 = vld [vmem:[%s1201_s3 + $0x8] sm:$0xff] (!%p269_p9)   ;;  %v913_v6 = vld [vmem:[%s1203_s5 + $0x10] sm:$0xff] (!%p269_p9)   ;;  %vm379_vm0 = vcmask (!%p269_p9), 261120   ;;  %s310_s22 = sand.u32 (!%p269_p9), 1, %s973_s25  }
   0xe   : > { %272 = sbr.rel (%p269_p9) target bundleno = 511 (0x1ff), region = 48  ;;  %p318_p10 = scmp.lt.s32.totalorder (!%p269_p9), %s1078_s15, 4  ;;  %827 = vmatprep.subr.bf16.mxu0 (!%p269_p9), %v907_v0  ;;  %v909_v2 = vld [vmem:[%s1200_s2] sm:$0xff] (!%p269_p9)   ;;  %v912_v4 = vld [vmem:[%s1203_s5 + $0x8] sm:$0xff] (!%p269_p9)   ;;  %v914_v16 = vld [vmem:[%s1203_s5 + $0x18] sm:$0xff] (!%p269_p9)  }
   0xf   : > { %828 = vmatpush3.bf16.msra.mxu0 (!%p269_p9), %v907_v0  ;;  %v911_v3 = vld [vmem:[%s1203_s5] sm:$0xff] (!%p269_p9)   ;;  %v910_v14 = vld [vmem:[%s1200_s2 + $0x8] sm:$0xff] (!%p269_p9)   ;;  %v917_v22 = vld [vmem:[%s1203_s5 + $0x30] sm:$0xff] (!%p269_p9)   ;;  %s757_s8 = sshll.u32 (!%p269_p9), %s310_s22, 4  ;;  %s1138_s13 = scalar_lea.sflag (!%p269_p9), [#allocation3], %s310_s22 }
  0x10   : > { %829 = vmatprep.subr.bf16.mxu0 (!%p269_p9), %v908_v1  ;;  %843 = vmatprep.subr.bf16.mxu1 (!%p269_p9), %v911_v3  ;;  %v915_v17 = vld [vmem:[%s1203_s5 + $0x20] sm:$0xff] (!%p269_p9)   ;;  %v916_v21 = vld [vmem:[%s1203_s5 + $0x28] sm:$0xff] (!%p269_p9)   ;;  %v918_v23 = vld [vmem:[%s1203_s5 + $0x38] sm:$0xff] (!%p269_p9)   ;;  %s312_s9 = scalar_lea.vmem (!%p269_p9), [#allocation2], %s757_s8 }
  0x11   : > { %844 = vmatpush3.bf16.msra.mxu1 (!%p269_p9), %v911_v3  ;;  %v770_v24 = vld [vmem:[%s1202_s4] ss:$0 sm:$0xff] (!%p269_p9) }
  0x12   : > { %845 = vmatprep.subr.bf16.mxu1 (!%p269_p9), %v912_v4  ;;  %v771_v40 = vld [vmem:[%s1204_s6] ss:$0 sm:$0xff] (!%p269_p9) }
  0x13   : > { %830 = vmatpush3.bf16.msra.mxu0 (!%p269_p9), %v908_v1 }
  0x14   : > { %835 = vmatprep.subr.bf16.mxu0 (!%p269_p9), %v909_v2 }
  0x15   : > { %s319_s18 = scalar_select %p318_p10, %s1078_s15, 4  ;;  %846 = vmatpush3.bf16.msra.mxu1 %v912_v4 }
  0x16   : > { %847 = vmatprep.subr.bf16.mxu1 %v913_v6  ;;  %s668_s16 = ssub.s32 (%p1064_p5), 5, %s1078_s15 }
  0x17   : > { %s759_s23 = sshll.u32 %s319_s18, 3  ;;  %p669_p11 = scmp.lt.s32.totalorder (%p1064_p5), %s668_s16, 4 }
  0x18   : > { %s1097_s14 = scalar_lea.vmem %s1198_s0, %s759_s23  ;;  %s335_s19 = scalar_lea.vmem %s1199_s1, %s759_s23 }
  0x19   : > { %v357_v5 = vld [vmem:[%s335_s19] sm:$0xff]  ;;  %v358_v7 = vld [vmem:[%s335_s19 + $0x8] sm:$0xff]  ;;  %v359_v8 = vld [vmem:[%s335_s19 + $0x10] sm:$0xff]  ;;  %848 = vmatpush3.bf16.msra.mxu1 %v913_v6 }
  0x1a   : > { %v360_v9 = vld [vmem:[%s335_s19 + $0x18] sm:$0xff]  ;;  %v361_v10 = vpack.c.bf16 %v358_v7, %v357_v5  ;;  %v347_v12 = vld [vmem:[%s1097_s14] sm:$0xff]  ;;  %v348_v13 = vld [vmem:[%s1097_s14 + $0x8] sm:$0xff]  ;;  %849 = vmatprep.subr.bf16.mxu1 %v914_v16 }
  0x1b   : > { %v362_v11 = vpack.c.bf16 %v360_v9, %v359_v8  ;;  %v351_v15 = vpack.c.bf16 %v348_v13, %v347_v12  ;;  %v349_v18 = vld [vmem:[%s1097_s14 + $0x10] sm:$0xff]  ;;  %v350_v19 = vld [vmem:[%s1097_s14 + $0x18] sm:$0xff] }
  0x1c   : > { %831 = vmatprep.mubr.msk.bf16.mxu0 %vm379_vm0, %v361_v10  ;;  %v352_v20 = vpack.c.bf16 %v350_v19, %v349_v18 }
  0x1d   : > { %832 = vmatmul.mubr.msk.bf16.vlgmr.msra.gmra.mrb[0].mxu0 %vm379_vm0, %v362_v11  ;;  %850 = vmatpush3.bf16.msra.mxu1 %v914_v16 }
  0x1e   : > { %836 = vmatpush3.bf16.msra.mxu0 %v909_v2  ;;  %839 = vmatprep.mubr.msk.bf16.mxu0 %vm379_vm0, %v351_v15 }
  0x1f   : > { %837 = vmatprep.subr.bf16.mxu0 %v910_v14  ;;  %851 = vmatprep.subr.bf16.mxu1 %v915_v17 }
  0x21   : > { %852 = vmatpush3.bf16.msra.mxu1 %v915_v17 }
  0x22   : > { %838 = vmatpush3.bf16.msra.mxu0 %v910_v14  ;;  %853 = vmatprep.subr.bf16.mxu1 %v916_v21 }
  0x25   : > { %854 = vmatpush3.bf16.msra.mxu1 %v916_v21 }
  0x26   : > { %855 = vmatprep.subr.bf16.mxu1 %v917_v22 }
  0x29   : > { %840 = vmatmul.mubr.msk.bf16.vlgmr.msra.gmra.mrb[0].mxu0 %vm379_vm0, %v352_v20  ;;  %856 = vmatpush3.bf16.msra.mxu1 %v917_v22 }
  0x2a   : > { %857 = vmatprep.subr.bf16.mxu1 %v918_v23 }
  0x2d   : > { %858 = vmatpush3.bf16.msra.mxu1 %v918_v23 }
  0xfc   : > { %v841_v25 = vpop.f32.mrb[0].mxu0 }
  0xfd   : > { %v511_v26 = vadd.f32 %v841_v25, %v770_v24  ;;  %v487_v27 = vpop.f32.mrb[1].mxu0 }
  0xfe   : > { %v509_v28 = vadd.f32 %v770_v24, %v487_v27  ;;  %v842_v29 = vpop.f32.mrb[2].mxu0 }
  0xff   : > { %v512_v30 = vadd.f32 %v842_v29, %v770_v24  ;;  %v490_v31 = vpop.f32.mrb[3].mxu0  ;;  %v515_v33 = vmax.f32 %v511_v26, 0.0 }
 0x100   : > { %v510_v32 = vadd.f32 %v770_v24, %v490_v31  ;;  %v513_v35 = vmax.f32 %v509_v28, 0.0 }
 0x101   : > { %v516_v34 = vmax.f32 %v512_v30, 0.0 }
 0x102   : > { %v514_v36 = vmax.f32 %v510_v32, 0.0 }
 0x103   : > { %v518_v37 = vpack.c.bf16 %v516_v34, %v515_v33 }
 0x104   : > { %v517_v38 = vpack.c.bf16 %v514_v36, %v513_v35 }
 0x106   : > { %859 = vmatprep.mubr.bf16.mxu1 %v517_v38 }
 0x107   : > { %860 = vmatmul.mubr.bf16.vlgmr.msra.gmra.mrb[0].mxu1 %v518_v37 }
 0x1da   : > { %v861_v39 = vpop.f32.mrb[0].mxu1 }
 0x1db   : > { %v624_v41 = vpop.f32.mrb[1].mxu1  ;;  %v633_v43 = vadd.f32 %v861_v39, %v771_v40 }
 0x1dc   : > { %v862_v42 = vpop.f32.mrb[2].mxu1  ;;  %v625_v46 = vadd.f32 %v771_v40, %v624_v41  ;;  %666 = sbr.rel (!%p1064_p5) target bundleno = 511 (0x1ff), region = 52 }
 0x1dd   : > { %v636_v44 = vadd.f32 %v862_v42, %v771_v40  ;;  %v627_v45 = vpop.f32.mrb[3].mxu1 }
 0x1de   : > { %v628_v47 = vadd.f32 %v771_v40, %v627_v45 }
 0x1df   : > { %v806_v48 = vpack.c.bf16 %v636_v44, %v633_v43 }
 0x1e0   : > { %v801_v49 = vpack.c.bf16 %v628_v47, %v625_v46 }
 0x1e1   : > { %808 = vst [vmem:[%s312_s9 + $0x8] sm:$0xff] %v806_v48  }
 0x1e2   : > { %802 = vst [vmem:[%s312_s9] sm:$0xff] %v801_v49  }
 0x1e3   : > { %s1213_s16 = smov (!%p669_p11, %s668_s16), 4 }
 0x1e4   : > { %s1143_s17 = sshll.u32 %s1213_s16, 6 }
 0x1e5   : > { %s673_s19 = ssub.s32 256, %s1143_s17 }
 0x1e6   : > { %674 = vsyncadd %s1138_s13, %s673_s19  ;;  %p787_p12 = scmp.ne.s32.totalorder %s1143_s17, 0  ;;  %s797_s14 = sshll.u32 %s1047_s28, 8 }
 0x1e7   : > { %s1152_s11 = scalar_lea.hbm %s1205_s7, %s797_s14  ;;  %s679_s21 = sshll.u32 %s312_s9, 4  ;;  %s1154_s21 = int_to_ptr.vmem [resolvable:$true] %s679_s21 }
 0x1e8   : > { %s919_s15 = scalar_lea.vmem %s1154_s21, %s1143_s17  ;;  %s983_s22 = smov [#allocation2]  }
 0x1e9   : > { %p920_p13 = scmp.ne.s32.totalorder %s1154_s21, %s919_s15  ;;  %s923_s23 = sshll.u32 %s983_s22, 4  ;;  %s924_s23 = int_to_ptr.vmem [resolvable:$false] %s923_s23 }
 0x1ea   : > { %s925_s28 = scalar_lea.vmem %s924_s23, 512  ;;  %p926_p2 = scmp.lt.s32.totalorder %s1154_s21, %s924_s23 }
 0x1eb   : > { %p921_p0 = pnand %p920_p13, %p787_p12  ;;  %p927_p3 = scmp.lt.s32.totalorder %s925_s28, %s919_s15 }
 0x1ed   : > { %p922_p1 = pneg %p921_p0  ;;  %p928_p4 = por %p927_p3, %p926_p2 }
 0x1ef   : > { %p929_p5 = pnand %p928_p4, %p922_p1 }
 0x1f1   : > { %932 = shalt.err (!%p929_p5)
}
 0x1f2   : > { %s933_s29 = scalar_lea.hbm %s1152_s11, %s1143_s17  ;;  %s937_s16 = scalar_lea.hbm %s1205_s7, 320 }
 0x1f3   : > { %p934_p7 = scmp.ne.s32.totalorder %s1152_s11, %s933_s29  ;;  %p938_p10 = scmp.lt.u32.totalorder %s1152_s11, %s1205_s7 }
 0x1f4   : > { %p939_p11 = scmp.lt.u32.totalorder %s937_s16, %s933_s29  ;;  %p941_p0 = scmp.lt.u32.totalorder %s933_s29, %s1152_s11 }
 0x1f5   : > { %p935_p8 = pnand %p934_p7, %p787_p12 }
 0x1f6   : > { %p940_p13 = por %p939_p11, %p938_p10 }
 0x1f7   : > { %p936_p9 = pneg %p935_p8 }
 0x1f8   : > { %p942_p1 = por %p941_p0, %p940_p13 }
 0x1fa   : > { %p943_p2 = pnand %p942_p1, %p936_p9 }
 0x1fc   : > { %946 = shalt.err (!%p943_p2)
}
 0x1fd   : > { %s984_s18 = smov 64   ;;  %s985_s20 = smov 4  }
 0x1fe   : > { %685 = dma.vmem_to_hbm [thread:$0]  (%p787_p12), %s1154_s21, %s1143_s17, %s1152_s11, %s1138_s13, %s984_s18, %s984_s18, %s985_s20  }
 0x1ff PF: > { %p872_p3 = scmp.ge.s32.totalorder %s981_s27, 2  ;;  %s694_s15 = sand.u32 1, %s969_s24  }
 0x200   : > { %s695_s22 = scalar_lea.sflag [#allocation3], %s694_s15 }
 0x201   : > { %p869_p4 = pnand %p872_p3, %p1068_p6 }
 0x203   : > { %964 = dma.done.wait (!%p869_p4), %s695_s22, 256  }
 0x204   : > { %966 = vsyncadd (!%p869_p4), %s695_s22, 4294967040  ;;  %p17_p5 = scmp.ge.s32.totalorder %s1051_s30, 4   ;;  %s1208_s24 = smov %s973_s25 }
 0x205   : > { %s1209_s25 = smov %s977_s26  ;;  %s1210_s26 = smov %s1062_s10 }
 0x206   : > { %s1211_s27 = smov %s1051_s30  ;;  %19 = sbr.rel (!%p17_p5) target bundleno = 3 (0x3), region = 86 }
 0x20d   :  { %700 = vsyncpa [#allocation3], 1 }
 0x20e   :  { %702 = vsyncpa [#allocation3 + $0x1], 1 }

// kernel: tpu_custom_call.1
= control target key start
LH: loop header
LB: loop body
LE: loop exit
PB: predicated region body
PF: predicated region fallthrough
CT: control target
= control target key end

     0   :  { %12 = vsyncpa [#allocation3], 0  ;;  %s1198_s0 = inlined_call_operand.vmem [shape: f32[40,32], index: 0, kind: input, shape index: {}]   ;;  %s1199_s1 = inlined_call_operand.vmem [shape: f32[40,32], index: 1, kind: input, shape index: {}]   ;;  %s1200_s2 = inlined_call_operand.vmem [shape: bf16[32,128], index: 2, kind: input, shape index: {}]   ;;  %s1201_s3 = inlined_call_operand.vmem [shape: bf16[32,128], index: 3, kind: input, shape index: {}]   ;;  %s1202_s4 = inlined_call_operand.vmem [shape: f32[1,128], index: 4, kind: input, shape index: {}]   ;;  %s1203_s5 = inlined_call_operand.vmem [shape: bf16[128,128], index: 5, kind: input, shape index: {}]   ;;  %s1204_s6 = inlined_call_operand.vmem [shape: f32[1,128], index: 6, kind: input, shape index: {}]   ;;  %s1205_s7 = inlined_call_operand.hbm [shape: bf16[40,128], index: 7, kind: output, shape index: {}]  }
   0x1   :  { %14 = vsyncpa [#allocation3 + $0x1], 0  ;;  %s1026_s24 = smov 0   ;;  %s1028_s25 = smov 0  }
   0x2   :  { %s1030_s26 = smov 0   ;;  %s1032_s27 = smov 0  }
   0x3 LB: > { %s1047_s28 = sadd.s32 4294967295, %s981_s27   ;;  %s753_s29 = sadd.s32 4294967294, %s981_s27   ;;  %s981_s27 = sphi %s1032_s27, %s1211_s27   ;;  %s977_s26 = sphi %s1030_s26, %s1210_s26   ;;  %s973_s25 = sphi %s1028_s25, %s1209_s25   ;;  %s969_s24 = sphi %s1026_s24, %s1208_s24  }
   0x4   : > { %s1051_s30 = sadd.s32 1, %s981_s27   ;;  %s184_s8 = sadd.s32 1, %s977_s26 }
   0x5   : > { %s181_s9 = ssub.s32 %s981_s27, %s1051_s30  ;;  %p194_p0 = scmp.ne.s32.totalorder %s977_s26, %s973_s25 }
   0x6   : > { %p182_p1 = scmp.eq.s32.totalorder %s181_s9, 0  ;;  %p195_p2 = scmp.eq.s32.totalorder %s1047_s28, 1 }
   0x7   : > { %p200_p3 = scmp.ne.s32.totalorder %s973_s25, %s969_s24  ;;  %p201_p4 = scmp.eq.s32.totalorder %s753_s29, 1 }
   0x8   : > { %s1062_s10 = scalar_select %p182_p1, %s977_s26, %s184_s8  }
   0x9   : > { %p1064_p5 = por %p195_p2, %p194_p0  ;;  %p1068_p6 = por %p201_p4, %p200_p3 }
   0xa   : > { %p756_p7 = scmp.ge.s32.totalorder %s981_s27, 1  ;;  %p268_p8 = scmp.lt.s32.totalorder %s981_s27, 3 }
   0xc   : > { %p269_p9 = pnand %p756_p7, %p268_p8 }
   0xd   : > { %v907_v0 = vld [vmem:[%s1201_s3] sm:$0xff] (!%p269_p9)   ;;  %s1078_s15 = sshll.u32 (!%p269_p9), %s1047_s28, 2  ;;  %v908_v1 = vld [vmem:[%s1201_s3 + $0x8] sm:$0xff] (!%p269_p9)   ;;  %v913_v6 = vld [vmem:[%s1203_s5 + $0x10] sm:$0xff] (!%p269_p9)   ;;  %vm379_vm0 = vcmask (!%p269_p9), 261120   ;;  %s310_s22 = sand.u32 (!%p269_p9), 1, %s973_s25  }
   0xe   : > { %272 = sbr.rel (%p269_p9) target bundleno = 511 (0x1ff), region = 48  ;;  %p318_p10 = scmp.lt.s32.totalorder (!%p269_p9), %s1078_s15, 4  ;;  %827 = vmatprep.subr.bf16.mxu0 (!%p269_p9), %v907_v0  ;;  %v909_v2 = vld [vmem:[%s1200_s2] sm:$0xff] (!%p269_p9)   ;;  %v912_v4 = vld [vmem:[%s1203_s5 + $0x8] sm:$0xff] (!%p269_p9)   ;;  %v914_v16 = vld [vmem:[%s1203_s5 + $0x18] sm:$0xff] (!%p269_p9)  }
   0xf   : > { %828 = vmatpush3.bf16.msra.mxu0 (!%p269_p9), %v907_v0  ;;  %v911_v3 = vld [vmem:[%s1203_s5] sm:$0xff] (!%p269_p9)   ;;  %v910_v14 = vld [vmem:[%s1200_s2 + $0x8] sm:$0xff] (!%p269_p9)   ;;  %v917_v22 = vld [vmem:[%s1203_s5 + $0x30] sm:$0xff] (!%p269_p9)   ;;  %s757_s8 = sshll.u32 (!%p269_p9), %s310_s22, 4  ;;  %s1138_s13 = scalar_lea.sflag (!%p269_p9), [#allocation3], %s310_s22 }
  0x10   : > { %829 = vmatprep.subr.bf16.mxu0 (!%p269_p9), %v908_v1  ;;  %843 = vmatprep.subr.bf16.mxu1 (!%p269_p9), %v911_v3  ;;  %v915_v17 = vld [vmem:[%s1203_s5 + $0x20] sm:$0xff] (!%p269_p9)   ;;  %v916_v21 = vld [vmem:[%s1203_s5 + $0x28] sm:$0xff] (!%p269_p9)   ;;  %v918_v23 = vld [vmem:[%s1203_s5 + $0x38] sm:$0xff] (!%p269_p9)   ;;  %s312_s9 = scalar_lea.vmem (!%p269_p9), [#allocation2], %s757_s8 }
  0x11   : > { %844 = vmatpush3.bf16.msra.mxu1 (!%p269_p9), %v911_v3  ;;  %v770_v24 = vld [vmem:[%s1202_s4] ss:$0 sm:$0xff] (!%p269_p9) }
  0x12   : > { %845 = vmatprep.subr.bf16.mxu1 (!%p269_p9), %v912_v4  ;;  %v771_v40 = vld [vmem:[%s1204_s6] ss:$0 sm:$0xff] (!%p269_p9) }
  0x13   : > { %830 = vmatpush3.bf16.msra.mxu0 (!%p269_p9), %v908_v1 }
  0x14   : > { %835 = vmatprep.subr.bf16.mxu0 (!%p269_p9), %v909_v2 }
  0x15   : > { %s319_s18 = scalar_select %p318_p10, %s1078_s15, 4  ;;  %846 = vmatpush3.bf16.msra.mxu1 %v912_v4 }
  0x16   : > { %847 = vmatprep.subr.bf16.mxu1 %v913_v6  ;;  %s668_s16 = ssub.s32 (%p1064_p5), 5, %s1078_s15 }
  0x17   : > { %s759_s23 = sshll.u32 %s319_s18, 3  ;;  %p669_p11 = scmp.lt.s32.totalorder (%p1064_p5), %s668_s16, 4 }
  0x18   : > { %s1097_s14 = scalar_lea.vmem %s1198_s0, %s759_s23  ;;  %s335_s19 = scalar_lea.vmem %s1199_s1, %s759_s23 }
  0x19   : > { %v357_v5 = vld [vmem:[%s335_s19] sm:$0xff]  ;;  %v358_v7 = vld [vmem:[%s335_s19 + $0x8] sm:$0xff]  ;;  %v359_v8 = vld [vmem:[%s335_s19 + $0x10] sm:$0xff]  ;;  %848 = vmatpush3.bf16.msra.mxu1 %v913_v6 }
  0x1a   : > { %v360_v9 = vld [vmem:[%s335_s19 + $0x18] sm:$0xff]  ;;  %v361_v10 = vpack.c.bf16 %v358_v7, %v357_v5  ;;  %v347_v12 = vld [vmem:[%s1097_s14] sm:$0xff]  ;;  %v348_v13 = vld [vmem:[%s1097_s14 + $0x8] sm:$0xff]  ;;  %849 = vmatprep.subr.bf16.mxu1 %v914_v16 }
  0x1b   : > { %v362_v11 = vpack.c.bf16 %v360_v9, %v359_v8  ;;  %v351_v15 = vpack.c.bf16 %v348_v13, %v347_v12  ;;  %v349_v18 = vld [vmem:[%s1097_s14 + $0x10] sm:$0xff]  ;;  %v350_v19 = vld [vmem:[%s1097_s14 + $0x18] sm:$0xff] }
  0x1c   : > { %831 = vmatprep.mubr.msk.bf16.mxu0 %vm379_vm0, %v361_v10  ;;  %v352_v20 = vpack.c.bf16 %v350_v19, %v349_v18 }
  0x1d   : > { %832 = vmatmul.mubr.msk.bf16.vlgmr.msra.gmra.mrb[0].mxu0 %vm379_vm0, %v362_v11  ;;  %850 = vmatpush3.bf16.msra.mxu1 %v914_v16 }
  0x1e   : > { %836 = vmatpush3.bf16.msra.mxu0 %v909_v2  ;;  %839 = vmatprep.mubr.msk.bf16.mxu0 %vm379_vm0, %v351_v15 }
  0x1f   : > { %837 = vmatprep.subr.bf16.mxu0 %v910_v14  ;;  %851 = vmatprep.subr.bf16.mxu1 %v915_v17 }
  0x21   : > { %852 = vmatpush3.bf16.msra.mxu1 %v915_v17 }
  0x22   : > { %838 = vmatpush3.bf16.msra.mxu0 %v910_v14  ;;  %853 = vmatprep.subr.bf16.mxu1 %v916_v21 }
  0x25   : > { %854 = vmatpush3.bf16.msra.mxu1 %v916_v21 }
  0x26   : > { %855 = vmatprep.subr.bf16.mxu1 %v917_v22 }
  0x29   : > { %840 = vmatmul.mubr.msk.bf16.vlgmr.msra.gmra.mrb[0].mxu0 %vm379_vm0, %v352_v20  ;;  %856 = vmatpush3.bf16.msra.mxu1 %v917_v22 }
  0x2a   : > { %857 = vmatprep.subr.bf16.mxu1 %v918_v23 }
  0x2d   : > { %858 = vmatpush3.bf16.msra.mxu1 %v918_v23 }
  0xfc   : > { %v841_v25 = vpop.f32.mrb[0].mxu0 }
  0xfd   : > { %v511_v26 = vadd.f32 %v841_v25, %v770_v24  ;;  %v487_v27 = vpop.f32.mrb[1].mxu0 }
  0xfe   : > { %v509_v28 = vadd.f32 %v770_v24, %v487_v27  ;;  %v842_v29 = vpop.f32.mrb[2].mxu0 }
  0xff   : > { %v512_v30 = vadd.f32 %v842_v29, %v770_v24  ;;  %v490_v31 = vpop.f32.mrb[3].mxu0  ;;  %v515_v33 = vmax.f32 %v511_v26, 0.0 }
 0x100   : > { %v510_v32 = vadd.f32 %v770_v24, %v490_v31  ;;  %v513_v35 = vmax.f32 %v509_v28, 0.0 }
 0x101   : > { %v516_v34 = vmax.f32 %v512_v30, 0.0 }
 0x102   : > { %v514_v36 = vmax.f32 %v510_v32, 0.0 }
 0x103   : > { %v518_v37 = vpack.c.bf16 %v516_v34, %v515_v33 }
 0x104   : > { %v517_v38 = vpack.c.bf16 %v514_v36, %v513_v35 }
 0x106   : > { %859 = vmatprep.mubr.bf16.mxu1 %v517_v38 }
 0x107   : > { %860 = vmatmul.mubr.bf16.vlgmr.msra.gmra.mrb[0].mxu1 %v518_v37 }
 0x1da   : > { %v861_v39 = vpop.f32.mrb[0].mxu1 }
 0x1db   : > { %v624_v41 = vpop.f32.mrb[1].mxu1  ;;  %v633_v43 = vadd.f32 %v861_v39, %v771_v40 }
 0x1dc   : > { %v862_v42 = vpop.f32.mrb[2].mxu1  ;;  %v625_v46 = vadd.f32 %v771_v40, %v624_v41  ;;  %666 = sbr.rel (!%p1064_p5) target bundleno = 511 (0x1ff), region = 52 }
 0x1dd   : > { %v636_v44 = vadd.f32 %v862_v42, %v771_v40  ;;  %v627_v45 = vpop.f32.mrb[3].mxu1 }
 0x1de   : > { %v628_v47 = vadd.f32 %v771_v40, %v627_v45 }
 0x1df   : > { %v806_v48 = vpack.c.bf16 %v636_v44, %v633_v43 }
 0x1e0   : > { %v801_v49 = vpack.c.bf16 %v628_v47, %v625_v46 }
 0x1e1   : > { %808 = vst [vmem:[%s312_s9 + $0x8] sm:$0xff] %v806_v48  }
 0x1e2   : > { %802 = vst [vmem:[%s312_s9] sm:$0xff] %v801_v49  }
 0x1e3   : > { %s1213_s16 = smov (!%p669_p11, %s668_s16), 4 }
 0x1e4   : > { %s1143_s17 = sshll.u32 %s1213_s16, 6 }
 0x1e5   : > { %s673_s19 = ssub.s32 256, %s1143_s17 }
 0x1e6   : > { %674 = vsyncadd %s1138_s13, %s673_s19  ;;  %p787_p12 = scmp.ne.s32.totalorder %s1143_s17, 0  ;;  %s797_s14 = sshll.u32 %s1047_s28, 8 }
 0x1e7   : > { %s1152_s11 = scalar_lea.hbm %s1205_s7, %s797_s14  ;;  %s679_s21 = sshll.u32 %s312_s9, 4  ;;  %s1154_s21 = int_to_ptr.vmem [resolvable:$true] %s679_s21 }
 0x1e8   : > { %s919_s15 = scalar_lea.vmem %s1154_s21, %s1143_s17  ;;  %s983_s22 = smov [#allocation2]  }
 0x1e9   : > { %p920_p13 = scmp.ne.s32.totalorder %s1154_s21, %s919_s15  ;;  %s923_s23 = sshll.u32 %s983_s22, 4  ;;  %s924_s23 = int_to_ptr.vmem [resolvable:$false] %s923_s23 }
 0x1ea   : > { %s925_s28 = scalar_lea.vmem %s924_s23, 512  ;;  %p926_p2 = scmp.lt.s32.totalorder %s1154_s21, %s924_s23 }
 0x1eb   : > { %p921_p0 = pnand %p920_p13, %p787_p12  ;;  %p927_p3 = scmp.lt.s32.totalorder %s925_s28, %s919_s15 }
 0x1ed   : > { %p922_p1 = pneg %p921_p0  ;;  %p928_p4 = por %p927_p3, %p926_p2 }
 0x1ef   : > { %p929_p5 = pnand %p928_p4, %p922_p1 }
 0x1f1   : > { %932 = shalt.err (!%p929_p5)
}
 0x1f2   : > { %s933_s29 = scalar_lea.hbm %s1152_s11, %s1143_s17  ;;  %s937_s16 = scalar_lea.hbm %s1205_s7, 320 }
 0x1f3   : > { %p934_p7 = scmp.ne.s32.totalorder %s1152_s11, %s933_s29  ;;  %p938_p10 = scmp.lt.u32.totalorder %s1152_s11, %s1205_s7 }
 0x1f4   : > { %p939_p11 = scmp.lt.u32.totalorder %s937_s16, %s933_s29  ;;  %p941_p0 = scmp.lt.u32.totalorder %s933_s29, %s1152_s11 }
 0x1f5   : > { %p935_p8 = pnand %p934_p7, %p787_p12 }
 0x1f6   : > { %p940_p13 = por %p939_p11, %p938_p10 }
 0x1f7   : > { %p936_p9 = pneg %p935_p8 }
 0x1f8   : > { %p942_p1 = por %p941_p0, %p940_p13 }
 0x1fa   : > { %p943_p2 = pnand %p942_p1, %p936_p9 }
 0x1fc   : > { %946 = shalt.err (!%p943_p2)
}
 0x1fd   : > { %s984_s18 = smov 64   ;;  %s985_s20 = smov 4  }
 0x1fe   : > { %685 = dma.vmem_to_hbm [thread:$0]  (%p787_p12), %s1154_s21, %s1143_s17, %s1152_s11, %s1138_s13, %s984_s18, %s984_s18, %s985_s20  }
 0x1ff PF: > { %p872_p3 = scmp.ge.s32.totalorder %s981_s27, 2  ;;  %s694_s15 = sand.u32 1, %s969_s24  }
 0x200   : > { %s695_s22 = scalar_lea.sflag [#allocation3], %s694_s15 }
 0x201   : > { %p869_p4 = pnand %p872_p3, %p1068_p6 }
 0x203   : > { %964 = dma.done.wait (!%p869_p4), %s695_s22, 256  }
 0x204   : > { %966 = vsyncadd (!%p869_p4), %s695_s22, 4294967040  ;;  %p17_p5 = scmp.ge.s32.totalorder %s1051_s30, 4   ;;  %s1208_s24 = smov %s973_s25 }
 0x205   : > { %s1209_s25 = smov %s977_s26  ;;  %s1210_s26 = smov %s1062_s10 }
 0x206   : > { %s1211_s27 = smov %s1051_s30  ;;  %19 = sbr.rel (!%p17_p5) target bundleno = 3 (0x3), region = 86 }
 0x20d   :  { %700 = vsyncpa [#allocation3], 1 }
 0x20e   :  { %702 = vsyncpa [#allocation3 + $0x1], 1 }

</bundles_post_ra>
